<compile_context>
chip_gen: v6e
topology: v6e:2x2x1
jax: 0.10.0
libtpu: 0.0.40
codegen_flags: <defaults>
</compile_context>

<pallas_src>
import functools

import jax
import jax.numpy as jnp
from jax.experimental import pallas as pl
from jax.experimental.pallas import tpu as pltpu

SIZE_X, SIZE_Y, SIZE_Z = 10, 10, 5       # SimpleSpatialInput sizes
HIDDEN = SIZE_X + SIZE_Y + SIZE_Z        # 25
OUT = 15
OUT_PAD = 128                            # lane-dense output width
IN_FEATS = 3 * 9                         # 27 = flattened [3, 9] spatial features
HALF = 32                                # lane offset of the "normal" half in fused stage-1 RHS
FUSED_W = 2 * HALF                       # 64

# ---- packed parameter slab layout ([SLAB_ROWS, SLAB_COLS] f32) -------------------
OFF_W1 = 0        # rows [0, 27):  fused stage-1 weights: Wm at cols 0:25, Wn at cols 32:57
OFF_WLIN = 32     # rows [32, 57): linear weights [25, 25] at cols 0:25
OFF_WOUT = 64     # rows [64, 89): output weights [25, *] at cols 0:15 (cols 15:128 zero)
ROW_B1 = 96       # fused stage-1 bias: bm at cols 0:25, bn at cols 32:57
ROW_BLIN = 97     # b_lin at cols 0:25
ROW_BOUT = 98     # b_out at cols 0:15 (cols 15:128 zero)
SLAB_ROWS = 104
SLAB_COLS = 128

ALIGN = 16        # batch-tile alignment (bf16 sublane tile)
TB_MAX = 8192     # max batch tile: ~12 MiB double-buffered VMEM (bf16 in, f32 lane-dense out)


def actor_kernel(x_ref, w_ref, out_ref):
    out_w = out_ref.shape[-1]                                   # 128 (lane-dense) or 15

    x = x_ref[...]                                              # [TB, 27] bf16

    # Weights cast to bf16 in-kernel (slab is tiny; cast is negligible VPU work).
    w1 = w_ref[OFF_W1:OFF_W1 + IN_FEATS, 0:FUSED_W].astype(jnp.bfloat16)    # [27, 64]
    wl = w_ref[OFF_WLIN:OFF_WLIN + HIDDEN, 0:HIDDEN].astype(jnp.bfloat16)   # [25, 25]
    wo = w_ref[OFF_WOUT:OFF_WOUT + HIDDEN, 0:out_w].astype(jnp.bfloat16)    # [25, out_w]
    b1 = w_ref[ROW_B1:ROW_B1 + 1, 0:FUSED_W]                                # [1, 64]  f32
    bl = w_ref[ROW_BLIN:ROW_BLIN + 1, 0:HIDDEN]                             # [1, 25]  f32
    bo = w_ref[ROW_BOUT:ROW_BOUT + 1, 0:out_w]                              # [1, out_w] f32

    # Fused SimpleSpatial x/y/z, multiplier+normal in ONE MXU pass:
    #   p[:, 0:25]  = x @ Wm (+ bm),  p[:, 32:57] = x @ Wn (+ bn)
    p = jnp.dot(x, w1, preferred_element_type=jnp.float32) + b1             # [TB, 64] f32
    pm = p[:, 0:HIDDEN]                                                     # [TB, 25]
    pn = p[:, HALF:HALF + HIDDEN]                                           # [TB, 25] (lane realign)
    h = pm * pn                                                             # [TB, 25] f32

    r = jnp.dot(h.astype(jnp.bfloat16), wl, preferred_element_type=jnp.float32) + bl
    # Softsign via EUP reciprocal (approx) instead of a VALU divide.
    r = r * pl.reciprocal(1.0 + jnp.abs(r), approx=True)

    # Output weights/bias are zero-padded to out_w lanes, so this is one dense,
    # unmasked [TB, out_w] store (cols OUT: are exact zeros in lane-dense mode).
    out_ref[...] = (jnp.dot(r.astype(jnp.bfloat16), wo, preferred_element_type=jnp.float32)
                    + bo).astype(out_ref.dtype)


PARAM_ORDER = [
    "wx_m", "bx_m", "wx_n", "bx_n",
    "wy_m", "by_m", "wy_n", "by_n",
    "wz_m", "bz_m", "wz_n", "bz_n",
    "w_lin", "b_lin", "w_out", "b_out",
]


def init_params(key):
    """Deterministic synthetic parameters matching the PyTorch module's shapes."""
    keys = jax.random.split(key, len(PARAM_ORDER))
    shapes = {
        "wx_m": (6, SIZE_X), "bx_m": (1, SIZE_X), "wx_n": (3, SIZE_X), "bx_n": (1, SIZE_X),
        "wy_m": (6, SIZE_Y), "by_m": (1, SIZE_Y), "wy_n": (3, SIZE_Y), "by_n": (1, SIZE_Y),
        "wz_m": (6, SIZE_Z), "bz_m": (1, SIZE_Z), "wz_n": (3, SIZE_Z), "bz_n": (1, SIZE_Z),
        "w_lin": (HIDDEN, HIDDEN), "b_lin": (1, HIDDEN),
        "w_out": (HIDDEN, OUT),    "b_out": (1, OUT),
    }
    return {
        name: 0.1 * jax.random.normal(k, shapes[name], dtype=jnp.float32)
        for name, k in zip(PARAM_ORDER, keys)
    }


def pack_params(params):
    """Pack all 16 parameter tensors into one [SLAB_ROWS, SLAB_COLS] f32 slab.

    Stage-1 weights are embedded block-diagonally and side-by-side so one matmul
    computes both the multiplier and normal halves.  Flattened input layout
    x = spatial.reshape(B, 27): axis a -> cols a*9 + [0..8], multiplier features
    at offsets 0:6, normal features at offsets 6:9 of each axis.
    """
    slab = jnp.zeros((SLAB_ROWS, SLAB_COLS), jnp.float32)

    # Fused stage-1 weights [27, 64]: Wm at cols 0:25, Wn at cols HALF:HALF+25.
    slab = slab.at[OFF_W1 + 0:OFF_W1 + 6, 0:10].set(params["wx_m"])
    slab = slab.at[OFF_W1 + 9:OFF_W1 + 15, 10:20].set(params["wy_m"])
    slab = slab.at[OFF_W1 + 18:OFF_W1 + 24, 20:25].set(params["wz_m"])
    slab = slab.at[OFF_W1 + 6:OFF_W1 + 9, HALF + 0:HALF + 10].set(params["wx_n"])
    slab = slab.at[OFF_W1 + 15:OFF_W1 + 18, HALF + 10:HALF + 20].set(params["wy_n"])
    slab = slab.at[OFF_W1 + 24:OFF_W1 + 27, HALF + 20:HALF + 25].set(params["wz_n"])

    slab = slab.at[OFF_WLIN:OFF_WLIN + HIDDEN, 0:HIDDEN].set(params["w_lin"])
    slab = slab.at[OFF_WOUT:OFF_WOUT + HIDDEN, 0:OUT].set(params["w_out"])

    bm = jnp.concatenate([params["bx_m"], params["by_m"], params["bz_m"]], axis=1)  # [1, 25]
    bn = jnp.concatenate([params["bx_n"], params["by_n"], params["bz_n"]], axis=1)  # [1, 25]
    slab = slab.at[ROW_B1, 0:HIDDEN].set(bm[0])
    slab = slab.at[ROW_B1, HALF:HALF + HIDDEN].set(bn[0])
    slab = slab.at[ROW_BLIN, 0:HIDDEN].set(params["b_lin"][0])
    slab = slab.at[ROW_BOUT, 0:OUT].set(params["b_out"][0])
    return slab


def _round_up(n, m):
    return ((n + m - 1) // m) * m


def _choose_tb(B):
    """Pick a batch tile: large (amortize ~0.35 us/step), >=2 tiles when B >= 32
    (v7x megacore), aligned to ALIGN, preferring an exact divisor of B so the
    wrapper-side pad/slice passes are avoided when possible."""
    if B <= 2 * ALIGN:
        return _round_up(max(B, ALIGN), ALIGN)
    tb = min(TB_MAX, _round_up(pl.cdiv(B, 2), ALIGN))
    if B % ALIGN == 0:
        cand = tb
        floor_ = max(2 * ALIGN, tb // 2)
        while cand >= floor_:
            if B % cand == 0:
                return cand          # exact divisor -> no padding, tiles still large
            cand -= ALIGN
    return tb


@functools.partial(jax.jit, static_argnames=("tb", "lane_dense_out"))
def actor_forward(spatial, car_stats, params, tb=None, lane_dense_out=True):
    del car_stats  # unused by ActorModel.forward (matches the reference)
    B = spatial.shape[0]

    # Lane-friendly [B, 27] activation slab, fed to the MXU as bf16.
    # (Ideally the upstream producer emits bf16 directly; the cast here still
    #  halves the x VMEM tile and keeps the MXU on its native bf16 path.)
    x = spatial.reshape(B, IN_FEATS).astype(jnp.bfloat16)
    slab = pack_params(params)

    if tb is None:
        tb = _choose_tb(B)
    else:
        tb = max(ALIGN, _round_up(int(tb), ALIGN))   # validate user tb (8,128 constraint)

    num_tiles = pl.cdiv(B, tb)
    b_pad = num_tiles * tb
    if b_pad != B:
        x = jnp.pad(x, ((0, b_pad - B), (0, 0)))

    out_w = OUT_PAD if lane_dense_out else OUT

    out = pl.pallas_call(
        actor_kernel,
        out_shape=jax.ShapeDtypeStruct((b_pad, out_w), jnp.float32),
        grid=(num_tiles,),
        in_specs=[
            pl.BlockSpec((tb, IN_FEATS), lambda i: (i, 0)),          # activations, tiled
            pl.BlockSpec((SLAB_ROWS, SLAB_COLS), lambda i: (0, 0)),  # params, resident
        ],
        out_specs=pl.BlockSpec((tb, out_w), lambda i: (i, 0)),
        compiler_params=pltpu.CompilerParams(
            dimension_semantics=("parallel",),     # v7x: 2 TCs split tiles (>=2 tiles when B>=32)
            vmem_limit_bytes=32 * 1024 * 1024,     # TB=8192 tiles need >16 MiB on v5e default
        ),
    )(x, slab)

    if lane_dense_out:
        return out[:B, :OUT]
    return out[:B]


def actor_forward_ref(spatial, car_stats, params):
    """Pure-JAX f32 reference mirroring the PyTorch forward, for correctness check."""
    del car_stats

    def simple_spatial(sp, wm, bm, wn, bn):
        return (sp[:, 0:6] @ wm + bm) * (sp[:, 6:9] @ wn + bn)

    px = simple_spatial(spatial[:, 0], params["wx_m"], params["bx_m"],
                        params["wx_n"], params["bx_n"])
    py = simple_spatial(spatial[:, 1], params["wy_m"], params["by_m"],
                        params["wy_n"], params["by_n"])
    pz = simple_spatial(spatial[:, 2], params["wz_m"], params["bz_m"],
                        params["wz_n"], params["bz_n"])
    h = jnp.concatenate([px, py, pz], axis=1)
    r = h @ params["w_lin"] + params["b_lin"]
    r = r / (1.0 + jnp.abs(r))
    return r @ params["w_out"] + params["b_out"]


if __name__ == "__main__":
    key = jax.random.PRNGKey(0)
    k_params, k_spatial, k_stats, k_sp2, k_st2 = jax.random.split(key, 5)
    params = init_params(k_params)

    # bf16 matmul inputs + approx-reciprocal softsign => loosened parity tolerance
    # vs. the f32 reference (errors observed/estimated at the ~1e-3 level).
    TOL = dict(atol=2e-2, rtol=2e-2)

    # --- small single-tile case -------------------------------------------------
    B = 8
    spatial = jax.random.normal(k_spatial, (B, 3, 9), dtype=jnp.float32)
    car_stats = jax.random.normal(k_stats, (B, 4), dtype=jnp.float32)  # unused by forward
    out = jax.block_until_ready(actor_forward(spatial, car_stats, params))
    ref = actor_forward_ref(spatial, car_stats, params)
    assert out.shape == (B, OUT), out.shape
    assert jnp.allclose(out, ref, **TOL), "mismatch vs JAX reference (B=8)"

    # --- multi-tile + ragged batch (exercises pad/slice path and v7x 2-tile path)
    B2 = 200
    spatial2 = jax.random.normal(k_sp2, (B2, 3, 9), dtype=jnp.float32)
    car_stats2 = jax.random.normal(k_st2, (B2, 4), dtype=jnp.float32)
    out2 = jax.block_until_ready(actor_forward(spatial2, car_stats2, params, tb=64))
    ref2 = actor_forward_ref(spatial2, car_stats2, params)
    assert out2.shape == (B2, OUT), out2.shape
    assert jnp.allclose(out2, ref2, **TOL), "mismatch vs JAX reference (B=200, tb=64)"

    # --- narrow-output variant (for measuring the lane-dense trade on v5e) -------
    out3 = jax.block_until_ready(
        actor_forward(spatial2, car_stats2, params, tb=64, lane_dense_out=False))
    assert out3.shape == (B2, OUT), out3.shape
    assert jnp.allclose(out3, ref2, **TOL), "mismatch vs JAX reference (narrow out)"

    print("KERNEL_OK")
</pallas_src>

<mosaic_0001>
module attributes {stable_mosaic.version = 11 : i64} {
  func.func @actor_kernel(%arg0: i32, %arg1: memref<16x27xbf16, #tpu.memory_space<vmem>>, %arg2: memref<104x128xf32, #tpu.memory_space<vmem>>, %arg3: memref<16x128xf32, #tpu.memory_space<vmem>>) attributes {dimension_semantics = [#tpu.dimension_semantics<parallel>], iteration_bounds = array<i64: 1>, scalar_prefetch = 0 : i64, scratch_operands = 0 : i64, tpu.core_type = #tpu.core_type<tc>, window_params = [{transform_indices = @transform_0, window_bounds = array<i64: 16, 27>}, {pipeline_mode = #tpu.pipeline_mode<synchronous>, transform_indices = @transform_1, window_bounds = array<i64: 104, 128>}, {transform_indices = @transform_2, window_bounds = array<i64: 16, 128>}]} {
    %c0 = arith.constant 0 : index
    %c0_0 = arith.constant 0 : index
    %0 = vector.load %arg1[%c0, %c0_0] : memref<16x27xbf16, #tpu.memory_space<vmem>>, vector<16x27xbf16>
    %c0_1 = arith.constant 0 : index
    %c0_2 = arith.constant 0 : index
    %1 = vector.load %arg2[%c0_1, %c0_2] : memref<104x128xf32, #tpu.memory_space<vmem>>, vector<27x64xf32>
    %2 = arith.truncf %1 : vector<27x64xf32> to vector<27x64xbf16>
    %c32 = arith.constant 32 : index
    %c0_3 = arith.constant 0 : index
    %3 = vector.load %arg2[%c32, %c0_3] : memref<104x128xf32, #tpu.memory_space<vmem>>, vector<25x25xf32>
    %4 = arith.truncf %3 : vector<25x25xf32> to vector<25x25xbf16>
    %c64 = arith.constant 64 : index
    %c0_4 = arith.constant 0 : index
    %5 = vector.load %arg2[%c64, %c0_4] : memref<104x128xf32, #tpu.memory_space<vmem>>, vector<25x128xf32>
    %6 = arith.truncf %5 : vector<25x128xf32> to vector<25x128xbf16>
    %c96 = arith.constant 96 : index
    %c0_5 = arith.constant 0 : index
    %7 = vector.load %arg2[%c96, %c0_5] : memref<104x128xf32, #tpu.memory_space<vmem>>, vector<1x64xf32>
    %c97 = arith.constant 97 : index
    %c0_6 = arith.constant 0 : index
    %8 = vector.load %arg2[%c97, %c0_6] : memref<104x128xf32, #tpu.memory_space<vmem>>, vector<1x25xf32>
    %c98 = arith.constant 98 : index
    %c0_7 = arith.constant 0 : index
    %9 = vector.load %arg2[%c98, %c0_7] : memref<104x128xf32, #tpu.memory_space<vmem>>, vector<1x128xf32>
    %cst = arith.constant dense<0.000000e+00> : vector<16x64xf32>
    %10 = tpu.matmul %0, %2, %cst {dimension_numbers = #tpu.dot_dimension_numbers<[1], [0], [0], [1], [0, 0, 1, 1], [], []>} : vector<16x27xbf16>, vector<27x64xbf16>, vector<16x64xf32> -> vector<16x64xf32>
    %11 = vector.broadcast %7 : vector<1x64xf32> to vector<16x64xf32>
    %12 = arith.addf %10, %11 : vector<16x64xf32>
    %13 = vector.extract_strided_slice %12 {offsets = [0, 0], sizes = [16, 25], strides = [1, 1]} : vector<16x64xf32> to vector<16x25xf32>
    %14 = vector.extract_strided_slice %12 {offsets = [0, 32], sizes = [16, 25], strides = [1, 1]} : vector<16x64xf32> to vector<16x25xf32>
    %15 = arith.mulf %13, %14 : vector<16x25xf32>
    %16 = arith.truncf %15 : vector<16x25xf32> to vector<16x25xbf16>
    %cst_8 = arith.constant dense<0.000000e+00> : vector<16x25xf32>
    %17 = tpu.matmul %16, %4, %cst_8 {dimension_numbers = #tpu.dot_dimension_numbers<[1], [0], [0], [1], [0, 0, 1, 1], [], []>} : vector<16x25xbf16>, vector<25x25xbf16>, vector<16x25xf32> -> vector<16x25xf32>
    %18 = vector.broadcast %8 : vector<1x25xf32> to vector<16x25xf32>
    %19 = arith.addf %17, %18 : vector<16x25xf32>
    %20 = math.absf %19 : vector<16x25xf32>
    %cst_9 = arith.constant 1.000000e+00 : f32
    %21 = vector.broadcast %cst_9 : f32 to vector<16x25xf32>
    %22 = arith.addf %21, %20 : vector<16x25xf32>
    %23 = tpu.reciprocal %22 {approx = true} : vector<16x25xf32> -> vector<16x25xf32>
    %24 = arith.mulf %19, %23 : vector<16x25xf32>
    %25 = arith.truncf %24 : vector<16x25xf32> to vector<16x25xbf16>
    %cst_10 = arith.constant dense<0.000000e+00> : vector<16x128xf32>
    %26 = tpu.matmul %25, %6, %cst_10 {dimension_numbers = #tpu.dot_dimension_numbers<[1], [0], [0], [1], [0, 0, 1, 1], [], []>} : vector<16x25xbf16>, vector<25x128xbf16>, vector<16x128xf32> -> vector<16x128xf32>
    %27 = vector.broadcast %9 : vector<1x128xf32> to vector<16x128xf32>
    %28 = arith.addf %26, %27 : vector<16x128xf32>
    %c0_11 = arith.constant 0 : index
    %c0_12 = arith.constant 0 : index
    %29 = vector.load %arg3[%c0_11, %c0_12] : memref<16x128xf32, #tpu.memory_space<vmem>>, vector<16x128xf32>
    tpu.vector_store %arg3[%c0_11, %c0_12], %28 {strides = array<i32>} : memref<16x128xf32, #tpu.memory_space<vmem>>, vector<16x128xf32>,
    return
  }
  func.func @transform_0(%arg0: i32) -> (i32, i32) {
    %c0_i32 = arith.constant 0 : i32
    %c0_i32_0 = arith.constant 0 : i32
    return %arg0, %c0_i32 : i32, i32
  }
  func.func @transform_1(%arg0: i32) -> (i32, i32) {
    %c0_i32 = arith.constant 0 : i32
    %c0_i32_0 = arith.constant 0 : i32
    %c0_i32_1 = arith.constant 0 : i32
    return %c0_i32, %c0_i32_0 : i32, i32
  }
  func.func @transform_2(%arg0: i32) -> (i32, i32) {
    %c0_i32 = arith.constant 0 : i32
    %c0_i32_0 = arith.constant 0 : i32
    return %arg0, %c0_i32 : i32, i32
  }
}

</mosaic_0001>

<bundles_post_ra>
// kernel: actor_forward.1
= control target key start
LH: loop header
LB: loop body
LE: loop exit
PB: predicated region body
PF: predicated region fallthrough
CT: control target
= control target key end

     0   :  { %vm48_vm0 = vcmask 1044480   ;;  %vm49_vm1 = vcmask 1045504   ;;  %v277_v0 = vmov 0.0   ;;  %v278_v3 = vmov 65535   ;;  %s280_s4 = smov 96   ;;  %s354_s1 = inlined_call_operand.vmem [shape: f32[104,128], index: 1, kind: input, shape index: {}]   ;;  %s355_s0 = inlined_call_operand.vmem [shape: bf16[16,27], index: 0, kind: input, shape index: {}]   ;;  %s356_s2 = inlined_call_operand.vmem [shape: f32[16,128], index: 2, kind: output, shape index: {}]  }
   0x1   :  { %244 = vmatprep.subr.bf16.mxu0 %v277_v0  ;;  %v16_v1 = vld [vmem:[%s354_s1 + $0x10] sm:$0xff]  ;;  %v17_v2 = vld [vmem:[%s354_s1 + $0x18] sm:$0x7]  ;;  %v50_v4 = vsel %vm48_vm0, 4294967295, %v278_v3  ;;  %252 = vmatprep.subr.bf16.mxu1 %v277_v0  ;;  %vm279_vm2 = vmmov 0   ;;  %v14_v7 = vld [vmem:[%s354_s1] sm:$0xff] }
   0x2   :  { %v19_v5 = vpack.c.bf16 %v17_v2, %v16_v1  ;;  %v51_v6 = vsel %vm49_vm1, %v50_v4, 0  ;;  %248 = vmatprep.mubr.msk.bf16.mxu0 %vm279_vm2, %v277_v0  ;;  %256 = vmatprep.mubr.msk.bf16.mxu1 %vm279_vm2, %v277_v0  ;;  %v15_v8 = vld [vmem:[%s354_s1 + $0x8] sm:$0xff]  ;;  %v272_v11 = vld [vmem:[%s355_s0] sm:$0xff]   ;;  %vm44_vm3 = vcmask 220160   ;;  %v22_v12 = vld [vmem:[%s354_s1 + $0x30] sm:$0xff]  ;;  %vm115_vm4 = vcmask 1043456  }
   0x3   :  { %v18_v10 = vpack.c.bf16 %v15_v8, %v14_v7  ;;  %v23_v13 = vld [vmem:[%s354_s1 + $0x38] sm:$0x1]  ;;  %v116_v15 = vsel %vm115_vm4, 4294967295, %v278_v3  ;;  %v28_v18 = vld [vmem:[%s354_s1 + $0x50] sm:$0xff]  ;;  %v20_v21 = vld [vmem:[%s354_s1 + $0x20] sm:$0xff]  ;;  %vm111_vm5 = vcmask 203776  }
   0x4   :  { %v53_v9 = vand.u32 %v51_v6, %v19_v5  ;;  %v25_v14 = vpack.c.bf16 %v23_v13, %v22_v12  ;;  %v117_v16 = vsel %vm48_vm0, %v116_v15, 0  ;;  %v29_v19 = vld [vmem:[%s354_s1 + $0x58] sm:$0x1]  ;;  %v21_v22 = vld [vmem:[%s354_s1 + $0x28] sm:$0xff]  ;;  %v228_v25 = vld [vmem:[%s354_s1 + $0x60] ss:$0 sm:$0xff] }
   0x5   :  { %v31_v20 = vpack.c.bf16 %v29_v19, %v28_v18  ;;  %v24_v24 = vpack.c.bf16 %v21_v22, %v20_v21  ;;  %v26_v37 = vld [vmem:[%s354_s1 + $0x40] sm:$0xff]  ;;  %v27_v38 = vld [vmem:[%s354_s1 + $0x48] sm:$0xff] }
   0x6   :  { %245 = vmatpush3.bf16.msra.mxu0 %v53_v9  ;;  %v119_v17 = vand.u32 %v117_v16, %v25_v14  ;;  %v30_v39 = vpack.c.bf16 %v27_v38, %v26_v37  ;;  %v231_v40 = vld [vmem:[%s354_s1 + $0x61] ss:$0 sm:$0xff]  ;;  %v233_v56 = vld [vmem:[%s354_s1 + $0x62] ss:$0 sm:$0xff] }
   0x7   :  { %246 = vmatprep.subr.bf16.mxu0 %v277_v0  ;;  %v179_v23 = vand.u32 %v117_v16, %v31_v20 }
   0x8   :  { %253 = vmatpush3.bf16.msra.mxu1 %v119_v17 }
   0x9   :  { %254 = vmatprep.subr.bf16.mxu1 %v277_v0 }
   0xa   :  { %247 = vmatpush3.bf16.msra.mxu0 %v18_v10 }
   0xb   :  { %260 = vmatprep.subr.bf16.mxu0 %v277_v0 }
   0xc   :  { %255 = vmatpush3.bf16.msra.mxu1 %v24_v24 }
   0xd   :  { %249 = vmatmul.mubr.msk.bf16.vlgmr.msra.gmra.mxu0 %vm44_vm3, %v272_v11 }
   0xe   :  { %264 = vmatprep.mubr.msk.bf16.mxu0 %vm279_vm2, %v277_v0  ;;  %261 = vmatpush3.bf16.msra.mxu0 %v179_v23 }
   0xf   :  { %262 = vmatprep.subr.bf16.mxu0 %v277_v0 }
  0x12   :  { %263 = vmatpush3.bf16.msra.mxu0 %v30_v39 }
  0xcd   :  { %v89_v26 = vpop.f32.mrf.mxu0 }
  0xce   :  { %v90_v27 = vadd.f32 %v228_v25, %v89_v26 }
  0xcf   :  { %v250_v28 = vpop.f32.mrf.mxu0 }
  0xd0   :  { %98 = vrot.lane.b32.xlu0 %v90_v27, %s280_s4 }
  0xd1   :  { %v92_v29 = vpop.f32.mrf.mxu0 }
  0xd2   :  { %v93_v30 = vadd.f32 %v228_v25, %v92_v29 }
  0xd3   :  { %v251_v31 = vpop.f32.mrf.mxu0 }
  0xd4   :  { %100 = vrot.lane.b32.xlu0 %v93_v30, %s280_s4 }
 0x142   :  { %v99_v32 = vpop.permute.xlu0 %98 }
 0x143   :  { %v104_v34 = vmul.f32 %v99_v32, %v90_v27 }
 0x146   :  { %v101_v33 = vpop.permute.xlu0 %100 }
 0x147   :  { %v105_v35 = vmul.f32 %v101_v33, %v93_v30 }
 0x149   :  { %v106_v36 = vpack.c.bf16 %v105_v35, %v104_v34 }
 0x14b   :  { %257 = vmatmul.mubr.msk.bf16.vlgmr.msra.gmra.mxu1 %vm111_vm5, %v106_v36 }
 0x20b   :  { %v155_v41 = vpop.f32.mrf.mxu1 }
 0x20c   :  { %v156_v42 = vadd.f32 %v231_v40, %v155_v41 }
 0x20d   :  { %v258_v43 = vpop.f32.mrf.mxu1 }
 0x20e   :  { %v162_v44 = vand.u32 2147483647, %v156_v42 }
 0x20f   :  { %v158_v45 = vpop.f32.mrf.mxu1 }
 0x210   :  { %v164_v46 = vadd.f32 1.0, %v162_v44  ;;  %v159_v47 = vadd.f32 %v231_v40, %v158_v45 }
 0x211   :  { %v259_v48 = vpop.f32.mrf.mxu1 }
 0x212   :  { %v163_v49 = vand.u32 2147483647, %v159_v47  ;;  %273 = vrcp.f32 %v164_v46 }
 0x214   :  { %v165_v50 = vadd.f32 1.0, %v163_v49 }
 0x216   :  { %275 = vrcp.f32 %v165_v50 }
 0x21f   :  { %v274_v51 = vpop.eup %273 }
 0x220   :  { %v168_v53 = vmul.f32 %v274_v51, %v156_v42 }
 0x223   :  { %v276_v52 = vpop.eup %275 }
 0x224   :  { %v169_v54 = vmul.f32 %v276_v52, %v159_v47 }
 0x226   :  { %v170_v55 = vpack.c.bf16 %v169_v54, %v168_v53 }
 0x228   :  { %265 = vmatmul.mubr.msk.bf16.vlgmr.msra.gmra.mxu0 %vm111_vm5, %v170_v55 }
 0x2e8   :  { %v215_v57 = vpop.f32.mrf.mxu0 }
 0x2e9   :  { %v216_v58 = vadd.f32 %v233_v56, %v215_v57 }
 0x2ea   :  { %v266_v59 = vpop.f32.mrf.mxu0 }
 0x2eb   :  { %222 = vst [vmem:[%s356_s2] sm:$0xff] %v216_v58 }
 0x2ec   :  { %v218_v60 = vpop.f32.mrf.mxu0 }
 0x2ed   :  { %v219_v61 = vadd.f32 %v233_v56, %v218_v60 }
 0x2ee   :  { %v267_v62 = vpop.f32.mrf.mxu0 }
 0x2ef   :  { %223 = vst [vmem:[%s356_s2 + $0x8] sm:$0xff] %v219_v61 }

</bundles_post_ra>
